<compile_context>
chip_gen: v7x
topology: tpu7x:2x2x1
jax: 0.10.0
libtpu: 0.0.40
codegen_flags: <defaults>
</compile_context>

<pallas_src>
import math
from functools import reduce

import numpy as np
import jax
import jax.numpy as jnp
from jax.experimental import pallas as pl
from jax.experimental.pallas import tpu as pltpu


def _bilinear_upsample_matrix(n_in: int, n_out: int) -> np.ndarray:
    """Matrix M (n_out, n_in) such that M @ v bilinearly resamples v.

    Matches torch.nn.functional.interpolate(mode='bilinear', align_corners=False),
    i.e. the nn.Upsample used by SimpleBEV's UpsamplingConcat."""
    if n_in == n_out:
        return np.eye(n_out, dtype=np.float32)
    scale = n_in / n_out
    m = np.zeros((n_out, n_in), dtype=np.float32)
    for o in range(n_out):
        src = (o + 0.5) * scale - 0.5
        src = max(src, 0.0)                      # PyTorch clamps negative coords
        i0 = int(np.floor(src))
        frac = src - i0
        i0 = min(max(i0, 0), n_in - 1)
        i1 = min(i0 + 1, n_in - 1)
        m[o, i0] += 1.0 - frac
        m[o, i1] += frac
    return m


# ----------------------------------------------------------------- VMEM accounting
def _round_up(x, m):
    return ((x + m - 1) // m) * m


def _sublane_tile(dtype) -> int:
    return {4: 8, 2: 16, 1: 32}.get(jnp.dtype(dtype).itemsize, 8)


def _padded_bytes(shape, dtype) -> int:
    """VMEM bytes of one buffer with (sublane, lane) padding on the last two dims."""
    s = list(shape)
    if len(s) >= 1:
        s[-1] = _round_up(s[-1], 128)
    if len(s) >= 2:
        s[-2] = _round_up(s[-2], _sublane_tile(dtype))
    n = 1
    for d in s:
        n *= int(d)
    return n * jnp.dtype(dtype).itemsize


# ----------------------------------------------------------------------- kernel body
def _make_neck_kernel(channels, spatial, target_hw, out_dtype, c_tile,
                      seg_start, n_tiles, w_index, n_weights):
    n = len(channels)
    H, W = target_hw

    def kernel(*args):
        x_refs = args[:n]                      # per-scale blocks (1, c_tile, hi, wi)
        w_refs = args[n:n + n_weights]         # interpolation matrices (constant blocks)
        out_ref = args[n + n_weights]          # (1, c_tile, H, W)
        seg = pl.program_id(1)

        def scale_body(i):
            def body():
                hi, wi = spatial[i]
                needs_h = hi != H
                needs_w = wi != W
                x = x_refs[i][0]               # (c_tile, hi, wi), compute dtype

                if not needs_h and not needs_w:
                    # Identity resolution: one bulk copy in its own grid step, so it
                    # never competes with a matmul epilogue (review item).
                    out_ref[0] = x.astype(out_dtype)
                    return

                cdt = x.dtype
                wh = w_refs[w_index[i]['h']][...] if needs_h else None    # (H, hi)
                wwt = w_refs[w_index[i]['w']][...] if needs_w else None   # (wi, W)

                if needs_h and needs_w:
                    flops_w_first = hi * W * (wi + H)
                    flops_h_first = wi * H * (hi + W)
                    if flops_w_first <= flops_h_first:
                        # Lane-axis (W) upsample first: one flat MXU matmul
                        # (M = c_tile*hi, N = W); the remaining batched H matmul
                        # then also has N = W lanes.
                        y = jnp.dot(x.reshape(c_tile * hi, wi), wwt,
                                    preferred_element_type=jnp.float32)
                        y = y.reshape(c_tile, hi, W).astype(cdt)
                        wh_b = jnp.broadcast_to(wh, (c_tile, H, hi))
                        o = jnp.einsum('cuh,chw->cuw', wh_b, y,
                                       preferred_element_type=jnp.float32)
                    else:
                        wh_b = jnp.broadcast_to(wh, (c_tile, H, hi))
                        y = jnp.einsum('cuh,chw->cuw', wh_b, x,
                                       preferred_element_type=jnp.float32).astype(cdt)
                        o = jnp.dot(y.reshape(c_tile * H, wi), wwt,
                                    preferred_element_type=jnp.float32)
                        o = o.reshape(c_tile, H, W)
                elif needs_w:
                    # H already matches: a single flat MXU matmul (no identity matmul).
                    o = jnp.dot(x.reshape(c_tile * H, wi), wwt,
                                preferred_element_type=jnp.float32)
                    o = o.reshape(c_tile, H, W)
                else:
                    # W already matches: batched H matmul only.
                    # TODO(synk): for exact 2x factors this small-K batched matmul could
                    # be replaced by a pltpu.roll-based VPU/XLU stencil on v6e/v7x.
                    wh_b = jnp.broadcast_to(wh, (c_tile, H, hi))
                    o = jnp.einsum('cuh,chw->cuw', wh_b, x,
                                   preferred_element_type=jnp.float32)

                out_ref[0] = o.astype(out_dtype)
            return body

        # Exactly one branch fires per segment (segments partition the channel range).
        for i in range(n):
            lo = seg_start[i]
            ti = n_tiles[i]
            pl.when(jnp.logical_and(seg >= lo, seg < lo + ti))(scale_body(i))

    return kernel


# --------------------------------------------------------------------------- wrapper
def gaussian_neck(xs):
    """GaussianNeck.forward with align_res_layer = bilinear-upsample-to-x[0] and
    group_method = channel concat (the SimpleBEV UpsamplingConcat default)."""
    # TODO(synk): align_res_layer / group_method / list_output are injected modules in
    # PyTorch; here they are fixed to bilinear-upsample-to-finest + torch.cat(dim=1).
    if xs[0].ndim == 5:
        xs = [y.reshape((-1,) + y.shape[2:]) for y in xs]

    B = int(xs[0].shape[0])
    H, W = int(xs[0].shape[2]), int(xs[0].shape[3])
    channels = tuple(int(y.shape[1]) for y in xs)
    spatial = tuple((int(y.shape[2]), int(y.shape[3])) for y in xs)
    c_out = sum(channels)
    out_dtype = xs[0].dtype
    n = len(xs)

    # Fixed bilinear matrices, per axis, only where that axis actually resamples.
    # Kept in the compute dtype (exact for power-of-two factors; f32 MXU accumulation).
    w_arrays, w_index = [], []
    for x, (h, w) in zip(xs, spatial):
        entry = {}
        if h != H:
            entry['h'] = len(w_arrays)
            w_arrays.append(jnp.asarray(_bilinear_upsample_matrix(h, H), dtype=x.dtype))    # (H, h)
        if w != W:
            entry['w'] = len(w_arrays)
            w_arrays.append(jnp.asarray(_bilinear_upsample_matrix(w, W).T, dtype=x.dtype))  # (w, W)
        w_index.append(entry)
    n_weights = len(w_arrays)

    # Per-generation VMEM budget: headroom below physical (0.85x), generation-aware
    # (128 MiB parts get a higher cap than v7x's 64 MiB).
    try:
        capacity = int(pltpu.get_tpu_info().vmem_capacity_bytes)
    except Exception:
        capacity = 64 << 20
    vmem_cap = int(0.85 * capacity)

    def estimate(c_t):
        """Lane/sublane-padded VMEM estimate for one pipeline step at channel tile c_t."""
        total = 0
        for x, (h, w) in zip(xs, spatial):
            total += 2 * _padded_bytes((c_t, h, w), x.dtype)          # double-buffered inputs
        total += 2 * _padded_bytes((c_t, H, W), out_dtype)            # double-buffered output
        for m in w_arrays:
            total += 2 * _padded_bytes(m.shape, m.dtype)              # weights (constant index)
        interm = 0
        for x, (h, w) in zip(xs, spatial):
            needs_h, needs_w = h != H, w != W
            if not (needs_h or needs_w):
                continue
            b = 0
            if needs_h:
                b += _padded_bytes((c_t, H, h), x.dtype)              # broadcast Wh
            if needs_h and needs_w:                                   # mid result (f32 + cast copy)
                b += max(_padded_bytes((c_t, h, W), jnp.float32) + _padded_bytes((c_t, h, W), x.dtype),
                         _padded_bytes((c_t, H, w), jnp.float32) + _padded_bytes((c_t, H, w), x.dtype))
            b += _padded_bytes((c_t, H, W), jnp.float32)              # f32 final
            b += _padded_bytes((c_t, H, W), out_dtype)                # cast before store
            interm = max(interm, b)
        return total + interm + (2 << 20)                             # Mosaic scratch margin

    # Channel tile: largest common divisor of all Ci that fits the VMEM budget.
    g = reduce(math.gcd, channels)
    budget = int(0.75 * vmem_cap)
    c_tile = 1
    for d in sorted((d for d in range(1, g + 1) if g % d == 0), reverse=True):
        if d > 1024:
            continue
        if estimate(d) <= budget:
            c_tile = d
            break
    # TODO(synk): if gcd(channels)==1 this degrades to 1-channel tiles; a ragged segment
    # table via PrefetchScalarGridSpec would allow per-scale tile sizes.

    n_tiles = [c // c_tile for c in channels]
    seg_start = [0] * n
    for i in range(1, n):
        seg_start[i] = seg_start[i - 1] + n_tiles[i - 1]
    n_seg = sum(n_tiles)

    kernel = _make_neck_kernel(channels, spatial, (H, W), out_dtype, c_tile,
                               seg_start, n_tiles, w_index, n_weights)

    # Output block index == segment index (c_tile divides every Ci, so concat offsets
    # line up) -> the channel concat stays fused into the output writeback.
    # Input index maps clamp into each scale's own segment range -> each input block is
    # DMA'd exactly once per batch element (revisits skip the copy).
    def in_index_map(lo, ti):
        def index_map(b, s):
            t = jnp.maximum(jnp.minimum(s - lo, ti - 1), 0)
            return (b, t, 0, 0)
        return index_map

    in_specs = []
    for i, (h, w) in enumerate(spatial):
        in_specs.append(pl.BlockSpec((1, c_tile, h, w), in_index_map(seg_start[i], n_tiles[i])))
    for m in w_arrays:
        # TODO(synk): single-buffer these constant-index weights (pl.Buffered(1)) and
        # sweep pl.Buffered(3) on the output spec once pipeline_mode is validated here.
        in_specs.append(pl.BlockSpec(m.shape, lambda b, s: (0, 0)))

    out_spec = pl.BlockSpec((1, c_tile, H, W), lambda b, s: (b, s, 0, 0))

    vmem_limit = int(min(max(estimate(c_tile), 32 << 20), vmem_cap))

    fn = pl.pallas_call(
        kernel,
        out_shape=jax.ShapeDtypeStruct((B, c_out, H, W), out_dtype),
        grid=(B, n_seg),
        in_specs=in_specs,
        out_specs=out_spec,
        compiler_params=pltpu.CompilerParams(
            dimension_semantics=("parallel", "parallel"),
            vmem_limit_bytes=vmem_limit,
        ),
    )
    return fn(*xs, *w_arrays)


def _reference(xs):
    """Plain-JAX reference with the same interpolation matrices (f32 throughout)."""
    if xs[0].ndim == 5:
        xs = [y.reshape((-1,) + y.shape[2:]) for y in xs]
    H, W = xs[0].shape[2], xs[0].shape[3]
    outs = []
    for y in xs:
        h, w = y.shape[2], y.shape[3]
        wh = jnp.asarray(_bilinear_upsample_matrix(h, H))
        ww = jnp.asarray(_bilinear_upsample_matrix(w, W))
        outs.append(jnp.einsum('Hh,bchw,Ww->bcHW', wh, y.astype(jnp.float32), ww))
    return jnp.concatenate(outs, axis=1).astype(xs[0].dtype)


if __name__ == "__main__":
    key = jax.random.PRNGKey(0)
    k1, k2 = jax.random.split(key)
    # Multi-camera backbone features at two scales: (B, n_cam, C, H, W).
    x_hi = jax.random.normal(k1, (2, 2, 4, 16, 16), dtype=jnp.float32)
    x_lo = jax.random.normal(k2, (2, 2, 8, 8, 8), dtype=jnp.float32)

    out = gaussian_neck([x_hi, x_lo])
    out = jax.block_until_ready(out)

    assert out.shape == (4, 12, 16, 16), out.shape
    ref = _reference([x_hi, x_lo])
    # f32 inputs: tight tolerance (bf16 inputs would need ~1e-2 due to the intermediate cast).
    np.testing.assert_allclose(np.asarray(out), np.asarray(ref), rtol=1e-5, atol=1e-5)
    print("KERNEL_OK")
</pallas_src>

<mosaic_0001>
module attributes {stable_mosaic.version = 11 : i64} {
  func.func @kernel(%arg0: i32, %arg1: i32, %arg2: memref<1x4x16x16xf32, #tpu.memory_space<vmem>>, %arg3: memref<1x4x8x8xf32, #tpu.memory_space<vmem>>, %arg4: memref<16x8xf32, #tpu.memory_space<vmem>>, %arg5: memref<8x16xf32, #tpu.memory_space<vmem>>, %arg6: memref<1x4x16x16xf32, #tpu.memory_space<vmem>>) attributes {dimension_semantics = [#tpu.dimension_semantics<parallel>, #tpu.dimension_semantics<parallel>], iteration_bounds = array<i64: 4, 3>, scalar_prefetch = 0 : i64, scratch_operands = 0 : i64, tpu.core_type = #tpu.core_type<tc>, window_params = [{transform_indices = @transform_0, window_bounds = array<i64: 1, 4, 16, 16>}, {transform_indices = @transform_1, window_bounds = array<i64: 1, 4, 8, 8>}, {pipeline_mode = #tpu.pipeline_mode<synchronous>, transform_indices = @transform_2, window_bounds = array<i64: 16, 8>}, {pipeline_mode = #tpu.pipeline_mode<synchronous>, transform_indices = @transform_3, window_bounds = array<i64: 8, 16>}, {transform_indices = @transform_4, window_bounds = array<i64: 1, 4, 16, 16>}]} {
    %c0_i32 = arith.constant 0 : i32
    %0 = arith.cmpi sge, %arg1, %c0_i32 : i32
    %c1_i32 = arith.constant 1 : i32
    %1 = arith.cmpi slt, %arg1, %c1_i32 : i32
    %2 = arith.andi %0, %1 : i1
    %3 = arith.extui %2 : i1 to i32
    %c0_i32_0 = arith.constant 0 : i32
    %4 = arith.cmpi ne, %3, %c0_i32_0 : i32
    scf.if %4 {
      %c0 = arith.constant 0 : index
      %c0_3 = arith.constant 0 : index
      %c0_4 = arith.constant 0 : index
      %c0_5 = arith.constant 0 : index
      %10 = vector.load %arg2[%c0, %c0_3, %c0_4, %c0_5] : memref<1x4x16x16xf32, #tpu.memory_space<vmem>>, vector<1x4x16x16xf32>
      %11 = vector.shape_cast %10 : vector<1x4x16x16xf32> to vector<4x16x16xf32>
      %c0_6 = arith.constant 0 : index
      %c0_7 = arith.constant 0 : index
      %c0_8 = arith.constant 0 : index
      %c0_9 = arith.constant 0 : index
      %12 = vector.load %arg6[%c0_6, %c0_7, %c0_8, %c0_9] : memref<1x4x16x16xf32, #tpu.memory_space<vmem>>, vector<1x4x16x16xf32>
      %13 = vector.shape_cast %12 : vector<1x4x16x16xf32> to vector<4x16x16xf32>
      %14 = vector.shape_cast %11 : vector<4x16x16xf32> to vector<1x4x16x16xf32>
      tpu.vector_store %arg6[%c0_6, %c0_7, %c0_8, %c0_9], %14 {strides = array<i32>} : memref<1x4x16x16xf32, #tpu.memory_space<vmem>>, vector<1x4x16x16xf32>,
    } else {
    }
    %c1_i32_1 = arith.constant 1 : i32
    %5 = arith.cmpi sge, %arg1, %c1_i32_1 : i32
    %c3_i32 = arith.constant 3 : i32
    %6 = arith.cmpi slt, %arg1, %c3_i32 : i32
    %7 = arith.andi %5, %6 : i1
    %8 = arith.extui %7 : i1 to i32
    %c0_i32_2 = arith.constant 0 : i32
    %9 = arith.cmpi ne, %8, %c0_i32_2 : i32
    scf.if %9 {
      %c0 = arith.constant 0 : index
      %c0_3 = arith.constant 0 : index
      %c0_4 = arith.constant 0 : index
      %c0_5 = arith.constant 0 : index
      %10 = vector.load %arg3[%c0, %c0_3, %c0_4, %c0_5] : memref<1x4x8x8xf32, #tpu.memory_space<vmem>>, vector<1x4x8x8xf32>
      %11 = vector.shape_cast %10 : vector<1x4x8x8xf32> to vector<4x8x8xf32>
      %c0_6 = arith.constant 0 : index
      %c0_7 = arith.constant 0 : index
      %12 = vector.load %arg4[%c0_6, %c0_7] : memref<16x8xf32, #tpu.memory_space<vmem>>, vector<16x8xf32>
      %c0_8 = arith.constant 0 : index
      %c0_9 = arith.constant 0 : index
      %13 = vector.load %arg5[%c0_8, %c0_9] : memref<8x16xf32, #tpu.memory_space<vmem>>, vector<8x16xf32>
      %14 = vector.shape_cast %11 : vector<4x8x8xf32> to vector<32x8xf32>
      %cst = arith.constant dense<0.000000e+00> : vector<32x16xf32>
      %15 = tpu.matmul %14, %13, %cst {dimension_numbers = #tpu.dot_dimension_numbers<[1], [0], [0], [1], [0, 0, 1, 1], [], []>} : vector<32x8xf32>, vector<8x16xf32>, vector<32x16xf32> -> vector<32x16xf32>
      %16 = vector.shape_cast %15 : vector<32x16xf32> to vector<4x8x16xf32>
      %17 = vector.shape_cast %12 : vector<16x8xf32> to vector<1x16x8xf32>
      %18 = vector.broadcast %17 : vector<1x16x8xf32> to vector<4x16x8xf32>
      "tpu.trace_start"() <{level = 10 : i32, message = "cuh,chw->cuw"}> : () -> ()
      %cst_10 = arith.constant dense<0.000000e+00> : vector<4x16x16xf32>
      %19 = tpu.matmul %18, %16, %cst_10 {dimension_numbers = #tpu.dot_dimension_numbers<[2], [1], [1], [2], [0, 0, 0, 1, 1, 2], [0], [0]>} : vector<4x16x8xf32>, vector<4x8x16xf32>, vector<4x16x16xf32> -> vector<4x16x16xf32>
      "tpu.trace_stop"() : () -> ()
      %c0_11 = arith.constant 0 : index
      %c0_12 = arith.constant 0 : index
      %c0_13 = arith.constant 0 : index
      %c0_14 = arith.constant 0 : index
      %20 = vector.load %arg6[%c0_11, %c0_12, %c0_13, %c0_14] : memref<1x4x16x16xf32, #tpu.memory_space<vmem>>, vector<1x4x16x16xf32>
      %21 = vector.shape_cast %20 : vector<1x4x16x16xf32> to vector<4x16x16xf32>
      %22 = vector.shape_cast %19 : vector<4x16x16xf32> to vector<1x4x16x16xf32>
      tpu.vector_store %arg6[%c0_11, %c0_12, %c0_13, %c0_14], %22 {strides = array<i32>} : memref<1x4x16x16xf32, #tpu.memory_space<vmem>>, vector<1x4x16x16xf32>,
    } else {
    }
    return
  }
  func.func @transform_0(%arg0: i32, %arg1: i32) -> (i32, i32, i32, i32) {
    %c0_i32 = arith.constant 0 : i32
    %0 = arith.subi %arg1, %c0_i32 : i32
    %c0_i32_0 = arith.constant 0 : i32
    %1 = arith.minsi %0, %c0_i32_0 : i32
    %c0_i32_1 = arith.constant 0 : i32
    %2 = arith.maxsi %1, %c0_i32_1 : i32
    %c0_i32_2 = arith.constant 0 : i32
    %c0_i32_3 = arith.constant 0 : i32
    %c0_i32_4 = arith.constant 0 : i32
    return %arg0, %2, %c0_i32_2, %c0_i32_3 : i32, i32, i32, i32
  }
  func.func @transform_1(%arg0: i32, %arg1: i32) -> (i32, i32, i32, i32) {
    %c1_i32 = arith.constant 1 : i32
    %0 = arith.subi %arg1, %c1_i32 : i32
    %c1_i32_0 = arith.constant 1 : i32
    %1 = arith.minsi %0, %c1_i32_0 : i32
    %c0_i32 = arith.constant 0 : i32
    %2 = arith.maxsi %1, %c0_i32 : i32
    %c0_i32_1 = arith.constant 0 : i32
    %c0_i32_2 = arith.constant 0 : i32
    %c0_i32_3 = arith.constant 0 : i32
    return %arg0, %2, %c0_i32_1, %c0_i32_2 : i32, i32, i32, i32
  }
  func.func @transform_2(%arg0: i32, %arg1: i32) -> (i32, i32) {
    %c0_i32 = arith.constant 0 : i32
    %c0_i32_0 = arith.constant 0 : i32
    %c0_i32_1 = arith.constant 0 : i32
    return %c0_i32, %c0_i32_0 : i32, i32
  }
  func.func @transform_3(%arg0: i32, %arg1: i32) -> (i32, i32) {
    %c0_i32 = arith.constant 0 : i32
    %c0_i32_0 = arith.constant 0 : i32
    %c0_i32_1 = arith.constant 0 : i32
    return %c0_i32, %c0_i32_0 : i32, i32
  }
  func.func @transform_4(%arg0: i32, %arg1: i32) -> (i32, i32, i32, i32) {
    %c0_i32 = arith.constant 0 : i32
    %c0_i32_0 = arith.constant 0 : i32
    %c0_i32_1 = arith.constant 0 : i32
    return %arg0, %arg1, %c0_i32, %c0_i32_0 : i32, i32, i32, i32
  }
}

</mosaic_0001>

<bundles_post_ra>
// kernel: tpu_custom_call.1
= control target key start
LH: loop header
LB: loop body
LE: loop exit
PB: predicated region body
PF: predicated region fallthrough
CT: control target
= control target key end

     0   :  { %s1817_s0 = inlined_call_operand.hbm [shape: f32[4,4,16,16], index: 0, kind: input, shape index: {}]   ;;  %s1818_s1 = inlined_call_operand.hbm [shape: f32[4,8,8,8], index: 1, kind: input, shape index: {}]   ;;  %s1819_s2 = inlined_call_operand.vmem [shape: f32[16,8], index: 2, kind: input, shape index: {}]   ;;  %s1820_s3 = inlined_call_operand.vmem [shape: f32[8,16], index: 3, kind: input, shape index: {}]   ;;  %s1821_s4 = inlined_call_operand.hbm [shape: f32[4,12,16,16], index: 4, kind: output, shape index: {}]  }
   0x1   :  { %1834 = sst [smem:[#allocation19_spill]] %s1817_s0 }
   0x2   :  { %1835 = sst [smem:[#allocation20_spill]] %s1821_s4 }
   0x3   :  { %9 = vsyncpa [#allocation3], 0 }
   0x4   :  { %11 = vsyncpa [#allocation3 + $0x1], 0 }
   0x5   :  { %12 = vsyncpa [#allocation6], 0 }
   0x6   :  { %14 = vsyncpa [#allocation6 + $0x1], 0 }
   0x7   :  { %15 = vsyncpa [#allocation4], 0 }
   0x8   :  { %17 = vsyncpa [#allocation4 + $0x1], 0  ;;  %s1401_s15 = smov 0   ;;  %s1403_s16 = smov 0  }
   0x9   :  { %s1405_s17 = smov 0   ;;  %s1407_s18 = smov 0  }
   0xa   :  { %s1409_s19 = smov 0   ;;  %s1411_s20 = smov 0  }
   0xb   :  { %s1413_s21 = smov 0   ;;  %s1415_s22 = smov 0  }
   0xc   :  { %s1417_s23 = smov 0   ;;  %s1419_s24 = smov 0  }
   0xd   :  { %s1421_s25 = smov 0   ;;  %s1423_s26 = smov 0  }
   0xe   :  { %s1425_s27 = smov 0   ;;  %s1427_s28 = smov 0  }
   0xf LB: > { %1836 = sst [smem:[#allocation11_spill]] %s1347_s23  ;;  %s900_s29 = sadd.s32 4294967295, %s1367_s28   ;;  %s1367_s28 = sphi %s1427_s28, %s23_s28   ;;  %s1363_s27 = sphi %s1425_s27, %s1886_s27   ;;  %s1359_s26 = sphi %s1423_s26, %s1875_s26   ;;  %s1355_s25 = sphi %s1421_s25, %s1885_s25   ;;  %s1351_s24 = sphi %s1419_s24, %s1874_s24   ;;  %s1347_s23 = sphi %s1417_s23, %s1873_s23   ;;  %s1343_s22 = sphi %s1415_s22, %s1884_s22   ;;  %s1339_s21 = sphi %s1413_s21, %s1883_s21   ;;  %s1335_s20 = sphi %s1411_s20, %s1882_s20   ;;  %s1331_s19 = sphi %s1409_s19, %s1881_s19   ;;  %s1327_s18 = sphi %s1407_s18, %s1880_s18   ;;  %s1323_s17 = sphi %s1405_s17, %s1879_s17   ;;  %s1319_s16 = sphi %s1403_s16, %s1878_s16   ;;  %s1315_s15 = sphi %s1401_s15, %s1877_s15  }
  0x10   : > { %1837 = sst [smem:[#allocation12_spill]] %s1355_s25  ;;  %p59_p0 = scmp.ne.s32.totalorder %s1347_s23, %s1343_s22 }
  0x11   : > { %1838 = sst [smem:[#allocation13_spill]] %s1359_s26  ;;  %p1824_p1 = scmp.eq.s32.totalorder %s1367_s28, 0 }
  0x12   : > { %p65_p2 = scmp.ne.s32.totalorder %s1343_s22, %s1339_s21  ;;  %p1476_p3 = scmp.eq.s32.totalorder %s900_s29, 0 }
  0x13   : > { %p1480_p4 = scmp.eq.s32.totalorder %s900_s29, 11  ;;  %p61_p5 = por %p1824_p1, %p59_p0 }
  0x14   : > { %p1488_p6 = por %p1476_p3, %p65_p2  ;;  %p1823_p7 = scmp.lt.s32.totalorder %s1367_s28, 12 }
  0x15   : > { %s1840_s7 = scalar_select %p1480_p4, 1, 0 }
  0x16   : > { %s1841_s8 = scalar_select %p1488_p6, 1, 0 }
  0x17   : > { %s203_s9 = sand.u32 1, %s1347_s23   ;;  %s972_s10 = sshll.u32 %s1363_s27, 10 }
  0x18   : > { %s926_s11 = sshll.u32 %s203_s9, 6  ;;  %s1842_s0 = sld [smem:[#allocation19_spill]] }
  0x19   : > { %s207_s21 = scalar_lea.vmem [#allocation2], %s926_s11  ;;  %p1502_p8 = pnand %p1823_p7, %p61_p5 }
  0x1a   : > { %s221_s29 = sshll.u32 %s207_s21, 4  ;;  %s1508_s30 = scalar_lea.sflag [#allocation3], %s203_s9  ;;  %s1506_s29 = int_to_ptr.vmem [resolvable:$true] %s221_s29 }
  0x1b   : > { %p1159_p10 = pneg %p1502_p8 }
  0x1e   : > { %s1498_s14 = scalar_lea.hbm %s1842_s0, %s972_s10  ;;  %s1162_s13 = scalar_lea.hbm %s1842_s0, 4096 }
  0x1f   : > { %s1157_s12 = scalar_lea.hbm %s1498_s14, 1024  ;;  %p1163_p13 = scmp.lt.u32.totalorder %s1498_s14, %s1842_s0 }
  0x20   : > { %p1158_p9 = scmp.ne.s32.totalorder %s1498_s14, %s1157_s12  ;;  %p1164_p0 = scmp.lt.u32.totalorder %s1162_s13, %s1157_s12 }
  0x21   : > { %p1166_p5 = scmp.lt.u32.totalorder %s1157_s12, %s1498_s14 }
  0x22   : > { %p1160_p11 = pnand %p1159_p10, %p1158_p9  ;;  %p1165_p2 = por %p1164_p0, %p1163_p13 }
  0x24   : > { %p1161_p12 = pneg %p1160_p11  ;;  %p1167_p7 = por %p1166_p5, %p1165_p2 }
  0x26   : > { %p1168_p1 = pnand %p1167_p7, %p1161_p12 }
  0x28   : > { %1171 = shalt.err (!%p1168_p1)
}
  0x29   : > { %s1172_s9 = scalar_lea.vmem %s1506_s29, 1024  ;;  %s1369_s10 = smov [#allocation2]  }
  0x2a   : > { %p1173_p9 = scmp.ne.s32.totalorder %s1506_s29, %s1172_s9  ;;  %s1177_s11 = sshll.u32 %s1369_s10, 4  ;;  %s1178_s11 = int_to_ptr.vmem [resolvable:$false] %s1177_s11 }
  0x2b   : > { %s1179_s4 = scalar_lea.vmem %s1178_s11, 2048  ;;  %p1180_p4 = scmp.lt.s32.totalorder %s1506_s29, %s1178_s11 }
  0x2c   : > { %p1175_p11 = pnand %p1173_p9, %p1159_p10  ;;  %p1181_p13 = scmp.lt.s32.totalorder %s1179_s4, %s1172_s9 }
  0x2e   : > { %p1176_p6 = pneg %p1175_p11  ;;  %p1182_p0 = por %p1181_p13, %p1180_p4 }
  0x30   : > { %p1183_p2 = pnand %p1182_p0, %p1176_p6 }
  0x32   : > { %1186 = shalt.err (!%p1183_p2)
}
  0x33   : > { %s1826_s12 = smov 128   ;;  %s1827_s13 = smov 8  }
  0x34   : > { %1031 = dma.hbm_to_vmem [thread:$0]  (!%p1502_p8), %s1498_s14, 1024, %s1506_s29, %s1508_s30, %s1826_s12, %s1826_s12, %s1827_s13  }
  0x35   : > { %p946_p1 = scmp.ge.s32.totalorder %s1367_s28, 1  ;;  %p257_p4 = scmp.lt.s32.totalorder %s1367_s28, 13 }
  0x36   : > { %s32_s10 = sadd.s32 1, %s1359_s26  ;;  %s912_s11 = sadd.s32 4294967295, %s1359_s26 }
  0x37   : > { %p1541_p6 = pnand %p946_p1, %p257_p4  ;;  %p33_p7 = scmp.ge.s32.totalorder %s32_s10, 3 }
  0x38   : > { %p76_p10 = scmp.lt.s32.totalorder %s912_s11, 1  ;;  %p913_p12 = scmp.gt.s32.totalorder %s912_s11, 0 }
  0x39   : > { %s90_s30 = sadd.s32 1, %s1335_s20  ;;  %s1888_s10 = smov (%p33_p7, %s32_s10), 0 }
  0x3a   : > { %1845 = sst [smem:[#allocation14_spill]] %s1888_s10  ;;  %s1846_s5 = sadd.s32 1, %s1363_s27 }
  0x3b   : > { %s1890_s5 = smov (!%p33_p7, %s1846_s5), %s1363_s27  ;;  %s1892_s11 = smov (!%p76_p10, %s912_s11), 1 }
  0x3c   : > { %p37_p8 = scmp.ge.s32.totalorder %s1890_s5, 4  ;;  %s918_s14 = sadd.s32 4294967295, %s1888_s10 }
  0x3d   : > { %s1894_s11 = smov (!%p913_p12, %s1892_s11), 0  ;;  %p81_p5 = scmp.lt.s32.totalorder %s918_s14, 1 }
  0x3e   : > { %s1896_s5 = smov (%p37_p8, %s1890_s5), 0  ;;  %p919_p9 = scmp.gt.s32.totalorder %s918_s14, 0 }
  0x3f   : > { %1847 = sst [smem:[#allocation15_spill]] %s1896_s5  ;;  %s47_s29 = ssub.s32 %s1363_s27, %s1896_s5 }
  0x40   : > { %p97_p11 = scmp.ne.s32.totalorder %s1335_s20, %s1331_s19  ;;  %p50_p13 = scmp.eq.s32.totalorder %s47_s29, 0 }
  0x41   : > { %p103_p0 = scmp.ne.s32.totalorder %s1331_s19, %s1327_s18  ;;  %s1898_s14 = smov (!%p81_p5, %s918_s14), 1 }
  0x42   : > { %s1848_s4 = sadd.s32 1, %s1347_s23  ;;  %s1900_s14 = smov (!%p919_p9, %s1898_s14), 0 }
  0x43   : > { %s1568_s12 = scalar_select %p50_p13, %s1347_s23, %s1848_s4  }
  0x44   : > { %p1850_p2 = scmp.eq.s32.totalorder %s1367_s28, 0  ;;  %p1578_p4 = por %p103_p0, %p1476_p3 }
  0x45   : > { %1849 = sst [smem:[#allocation16_spill]] %s1568_s12  ;;  %s86_s18 = ssub.s32 %s1894_s11, %s1900_s14 }
  0x46   : > { %p1572_p1 = por %p97_p11, %p1850_p2  ;;  %s156_s0 = ssub.s32 %s1359_s26, %s1888_s10 }
  0x47   : > { %s1852_s9 = scalar_select %p1578_p4, 1, 0 }
  0x48   : > { %s87_s5 = sor.u32 %s86_s18, %s47_s29  ;;  %s157_s4 = sor.u32 %s156_s0, %s47_s29 }
  0x49   : > { %p88_p7 = scmp.eq.s32.totalorder %s87_s5, 0  ;;  %p158_p10 = scmp.eq.s32.totalorder %s157_s4, 0 }
  0x4a   : > { %s160_s12 = sadd.s32 1, %s1323_s17  ;;  %p170_p12 = scmp.ne.s32.totalorder %s1323_s17, %s1319_s16 }
  0x4b   : > { %s1589_s23 = scalar_select %p88_p7, %s1335_s20, %s90_s30  }
  0x4c   : > { %s1592_s25 = scalar_select %p158_p10, %s1323_s17, %s160_s12  }
  0x4d   : > { %1853 = sst [smem:[#allocation17_spill]] %s1589_s23  ;;  %p1855_p3 = scmp.ne.s32.totalorder %s1840_s7, 0 }
  0x4e   : > { %1854 = sst [smem:[#allocation18_spill]] %s1592_s25  ;;  %p176_p5 = scmp.ne.s32.totalorder %s1319_s16, %s1315_s15 }
  0x4f   : > { %p1596_p8 = por %p1855_p3, %p170_p12  ;;  %s1857_s14 = sadd.s32 4294967294, %s1367_s28  }
  0x50   : > { %p177_p9 = scmp.eq.s32.totalorder %s1857_s14, 11  ;;  %s231_s18 = sand.u32 1, %s1335_s20  }
  0x51   : > { %s1856_s6 = scalar_select %p1596_p8, 1, 0 }
  0x52   : > { %s936_s0 = sshll.u32 %s231_s18, 5  ;;  %p1605_p11 = por %p177_p9, %p176_p5 }
  0x53   : > { %s943_s30 = sshll.u32 %s1894_s11, 2  ;;  %s944_s29 = sshll.u32 %s1363_s27, 3 }
  0x54   : > { %s1858_s5 = scalar_select %p1605_p11, 1, 0 }
  0x55   : > { %s246_s4 = sadd.s32 %s944_s29, %s943_s30  ;;  %s235_s10 = scalar_lea.vmem [#allocation5], %s936_s0 }
  0x56   : > { %s249_s12 = sshll.u32 %s235_s10, 4  ;;  %s945_s26 = sshll.u32 %s246_s4, 7  ;;  %s1611_s12 = int_to_ptr.vmem [resolvable:$true] %s249_s12 }
  0x57   : > { %s1616_s25 = scalar_lea.hbm %s1818_s1, %s945_s26  ;;  %p1859_p13 = scmp.lt.s32.totalorder %s1367_s28, 12 }
  0x58   : > { %s1626_s10 = scalar_lea.sflag [#allocation6], %s231_s18  ;;  %s1187_s14 = scalar_lea.hbm %s1616_s25, 512 }
  0x59   : > { %p1622_p0 = pnand %p1859_p13, %p1572_p1  ;;  %p1188_p2 = scmp.ne.s32.totalorder %s1616_s25, %s1187_s14 }
  0x5a   : > { %s1192_s13 = scalar_lea.hbm %s1818_s1, 4096  ;;  %p1193_p1 = scmp.lt.u32.totalorder %s1616_s25, %s1818_s1 }
  0x5b   : > { %p1189_p7 = pneg %p1622_p0  ;;  %p1194_p3 = scmp.lt.u32.totalorder %s1192_s13, %s1187_s14 }
  0x5c   : > { %p1196_p9 = scmp.lt.u32.totalorder %s1187_s14, %s1616_s25 }
  0x5d   : > { %p1190_p10 = pnand %p1189_p7, %p1188_p2  ;;  %p1195_p5 = por %p1194_p3, %p1193_p1 }
  0x5f   : > { %p1191_p12 = pneg %p1190_p10  ;;  %p1197_p13 = por %p1196_p9, %p1195_p5 }
  0x61   : > { %p1198_p11 = pnand %p1197_p13, %p1191_p12 }
  0x63   : > { %1201 = shalt.err (!%p1198_p11)
}
  0x64   : > { %s1202_s18 = scalar_lea.vmem %s1611_s12, 512  ;;  %s1372_s29 = smov [#allocation5]  }
  0x65   : > { %p1203_p2 = scmp.ne.s32.totalorder %s1611_s12, %s1202_s18  ;;  %s1207_s4 = sshll.u32 %s1372_s29, 4  ;;  %s1208_s4 = int_to_ptr.vmem [resolvable:$false] %s1207_s4 }
  0x66   : > { %s1209_s7 = scalar_lea.vmem %s1208_s4, 1024  ;;  %p1210_p4 = scmp.lt.s32.totalorder %s1611_s12, %s1208_s4 }
  0x67   : > { %p1205_p10 = pnand %p1203_p2, %p1189_p7  ;;  %p1211_p1 = scmp.lt.s32.totalorder %s1209_s7, %s1202_s18 }
  0x69   : > { %p1206_p8 = pneg %p1205_p10  ;;  %p1212_p3 = por %p1211_p1, %p1210_p4 }
  0x6b   : > { %p1213_p5 = pnand %p1212_p3, %p1206_p8 }
  0x6d   : > { %1216 = shalt.err (!%p1213_p5)
}
  0x6e   : > { %s1861_s14 = smov 8   ;;  %s1862_s23 = smov 128  }
  0x6f   : > { %1034 = dma.hbm_to_vmem [thread:$0]  (!%p1622_p0), %s1616_s25, 512, %s1611_s12, %s1626_s10, %s1862_s23, %s1862_s23, %s1861_s14  }
  0x70   : > { %261 = sbr.rel (%p1541_p6) target bundleno = 607 (0x25f), region = 36  ;;  %s263_s26 = sand.u32 (!%p1541_p6), 1, %s1343_s22  }
  0x71   : > { %s947_s13 = sshll.u32 (!%p1541_p6), %s263_s26, 6  ;;  %s264_s0 = scalar_lea.sflag (!%p1541_p6), [#allocation3], %s263_s26 }
  0x72   : > { %s267_s30 = scalar_lea.vmem (!%p1541_p6), [#allocation2], %s947_s13  ;;  %p1863_p4 = scmp.ne.s32.totalorder (!%p1541_p6), %s1841_s8, 0 }
  0x77   : > { %1302 = dma.done.wait (%p1863_p4), %s264_s0, 1024  }
  0x78   : > { %1304 = vsyncadd (%p1863_p4), %s264_s0, 4294966272  ;;  %s272_s11 = sand.u32 1, %s1331_s19   ;;  %p1864_p8 = scmp.ne.s32.totalorder %s1852_s9, 0 }
  0x79   : > { %s948_s18 = sshll.u32 %s272_s11, 5  ;;  %s273_s29 = scalar_lea.sflag [#allocation6], %s272_s11 }
  0x7a   : > { %s1665_s25 = scalar_lea.vmem [#allocation5], %s948_s18 }
  0x7b   : > { %1306 = dma.done.wait (%p1864_p8), %s273_s29, 512  }
  0x7c   : > { %1308 = vsyncadd (%p1864_p8), %s273_s29, 4294966784  ;;  %s303_s21 = sand.u32 1, %s1319_s16   ;;  %p318_p6 = scmp.ge.s32.totalorder %s1351_s24, 0 }
  0x7d   : > { %s949_s8 = sshll.u32 %s303_s21, 6  ;;  %p319_p11 = scmp.lt.s32.totalorder %s1351_s24, 1 }
  0x7e   : > { %s1676_s12 = scalar_lea.vmem [#allocation7], %s949_s8 }
  0x7f   : > { %p320_p0 = pnand %p319_p11, %p318_p6 }
  0x80   : > { %v324_v0 = vld [vmem:[%s267_s30] sm:$0xff] (!%p320_p0)  ;;  %vm332_vm0 = vcmask (!%p320_p0), 130048   ;;  %v325_v1 = vld [vmem:[%s267_s30 + $0x8] sm:$0xff] (!%p320_p0)  ;;  %v326_v2 = vld [vmem:[%s267_s30 + $0x10] sm:$0xff] (!%p320_p0) }
  0x81   : > { %323 = sbr.rel (%p320_p0) target bundleno = 136 (0x88), region = 48  ;;  %333 = vst.msk [vmem:[%s1676_s12] sm:$0xff] (!%p320_p0), %vm332_vm0, %v324_v0  ;;  %334 = vst.msk [vmem:[%s1676_s12 + $0x8] sm:$0xff] (!%p320_p0), %vm332_vm0, %v325_v1  ;;  %v327_v3 = vld [vmem:[%s267_s30 + $0x18] sm:$0xff] (!%p320_p0)  ;;  %v328_v4 = vld [vmem:[%s267_s30 + $0x20] sm:$0xff] (!%p320_p0) }
  0x82   : > { %335 = vst.msk [vmem:[%s1676_s12 + $0x10] sm:$0xff] (!%p320_p0), %vm332_vm0, %v326_v2  ;;  %v329_v5 = vld [vmem:[%s267_s30 + $0x28] sm:$0xff] (!%p320_p0)  ;;  %336 = vst.msk [vmem:[%s1676_s12 + $0x18] sm:$0xff] (!%p320_p0), %vm332_vm0, %v327_v3  ;;  %v330_v6 = vld [vmem:[%s267_s30 + $0x30] sm:$0xff] (!%p320_p0) }
  0x83   : > { %337 = vst.msk [vmem:[%s1676_s12 + $0x20] sm:$0xff] (!%p320_p0), %vm332_vm0, %v328_v4  ;;  %338 = vst.msk [vmem:[%s1676_s12 + $0x28] sm:$0xff] (!%p320_p0), %vm332_vm0, %v329_v5  ;;  %v331_v7 = vld [vmem:[%s267_s30 + $0x38] sm:$0xff] (!%p320_p0) }
  0x84   : > { %339 = vst.msk [vmem:[%s1676_s12 + $0x30] sm:$0xff] (!%p320_p0), %vm332_vm0, %v330_v6  ;;  %340 = vst.msk [vmem:[%s1676_s12 + $0x38] sm:$0xff] (!%p320_p0), %vm332_vm0, %v331_v7 }
  0x88 PF: > { %p341_p7 = scmp.ge.s32.totalorder %s1351_s24, 1  ;;  %p342_p12 = scmp.lt.s32.totalorder %s1351_s24, 3 }
  0x8a   : > { %p343_p9 = pnand %p342_p12, %p341_p7 }
  0x8b   : > { %v353_v8 = vld [vmem:[%s1820_s3] sm:$0xff] (!%p343_p9)  ;;  %vm354_vm1 = vcmask (!%p343_p9), 64512   ;;  %v348_v10 = vld [vmem:[%s1665_s25 + $0x8] sm:$0xff] (!%p343_p9)  ;;  %v349_v11 = vld [vmem:[%s1665_s25 + $0x10] sm:$0xff] (!%p343_p9)  ;;  %vm758_vm2 = vcmask (!%p343_p9), 130048  }
  0x8c   : > { %346 = sbr.rel (%p343_p9) target bundleno = 579 (0x243), region = 52  ;;  %v347_v9 = vld [vmem:[%s1665_s25] sm:$0xff] (!%p343_p9)  ;;  %993 = vmatprep.subr.mxu0 (!%p343_p9), %v353_v8  ;;  %v350_v12 = vld [vmem:[%s1665_s25 + $0x18] sm:$0xff] (!%p343_p9)  ;;  %v352_v16 = vld [vmem:[%s1819_s2 + $0x8] sm:$0xff] (!%p343_p9) }
  0x8d   : > { %995 = vmatprep.mubr.msk.f32.mxu0 (!%p343_p9), %vm354_vm1, %v347_v9  ;;  %994 = vmatpush3.msra.mxu0 (!%p343_p9), %v353_v8  ;;  %v351_v13 = vld [vmem:[%s1819_s2] sm:$0xff] (!%p343_p9) }
  0x8e   : > { %996 = vmatmul.mubr.msk.f32.vlgmr.msra.gmra.mrb[0].mxu0 (!%p343_p9), %vm354_vm1, %v348_v10  ;;  %1003 = vmatprep.mubr.msk.f32.mxu1 (!%p343_p9), %vm354_vm1, %v351_v13 }
  0x8f   : > { %998 = vmatprep.mubr.msk.f32.mxu0 (!%p343_p9), %vm354_vm1, %v349_v11 }
  0x92   : > { %999 = vmatmul.mubr.msk.f32.gmra.mrb[2].mxu0 (!%p343_p9), %vm354_vm1, %v350_v12 }
  0x93   : > { %1013 = vmatprep.mubr.msk.f32.mxu0 %vm354_vm1, %v351_v13 }
 0x161   : > { %v997_v14 = vpop.f32.mrb[0].mxu0 }
 0x162   : > { %v433_v15 = vpop.f32.mrb[1].mxu0 }
 0x163   : > { %1001 = vmatprep.subr.mxu1 %v433_v15 }
 0x164   : > { %1002 = vmatpush3.msra.mxu1 %v433_v15 }
 0x165   : > { %v1000_v17 = vpop.f32.mrb[2].mxu0  ;;  %1004 = vmatmul.mubr.msk.f32.vlgmr.msra.gmra.mrb[0].mxu1 %vm354_vm1, %v352_v16  ;;  %1006 = vmatprep.subr.mxu1 %v997_v14 }
 0x166   : > { %v443_v18 = vpop.f32.mrb[3].mxu0  ;;  %1007 = vmatpush3.msra.mxu1 %v997_v14  ;;  %1008 = vmatprep.mubr.msk.f32.mxu1 %vm354_vm1, %v351_v13 }
 0x167   : > { %1011 = vmatprep.subr.mxu0 %v443_v18  ;;  %1016 = vmatprep.subr.mxu1 %v1000_v17 }
 0x168   : > { %1012 = vmatpush3.msra.mxu0 %v443_v18 }
 0x169   : > { %1009 = vmatmul.mubr.msk.f32.vlgmr.msra.gmra.mrb[2].mxu1 %vm354_vm1, %v352_v16  ;;  %1014 = vmatmul.mubr.msk.f32.vlgmr.msra.gmra.mrb[4].mxu0 %vm354_vm1, %v352_v16 }
 0x16a   : > { %1017 = vmatpush3.msra.mxu1 %v1000_v17  ;;  %1018 = vmatprep.mubr.msk.f32.mxu1 %vm354_vm1, %v351_v13 }
 0x16d   : > { %1019 = vmatmul.mubr.msk.f32.vlgmr.msra.gmra.mrb[4].mxu1 %vm354_vm1, %v352_v16 }
 0x238   : > { %v1005_v19 = vpop.f32.mrb[0].mxu1 }
 0x239   : > { %760 = vst.msk [vmem:[%s1676_s12 + $0x8] sm:$0xff] %vm758_vm2, %v1005_v19  ;;  %v524_v20 = vpop.f32.mrb[1].mxu1 }
 0x23a   : > { %759 = vst.msk [vmem:[%s1676_s12] sm:$0xff] %vm758_vm2, %v524_v20 }
 0x23c   : > { %v1010_v21 = vpop.f32.mrb[2].mxu1  ;;  %v1015_v22 = vpop.f32.mrb[4].mxu0 }
 0x23d   : > { %762 = vst.msk [vmem:[%s1676_s12 + $0x18] sm:$0xff] %vm758_vm2, %v1010_v21  ;;  %v599_v23 = vpop.f32.mrb[3].mxu1  ;;  %764 = vst.msk [vmem:[%s1676_s12 + $0x28] sm:$0xff] %vm758_vm2, %v1015_v22  ;;  %v674_v24 = vpop.f32.mrb[5].mxu0 }
 0x23e   : > { %761 = vst.msk [vmem:[%s1676_s12 + $0x10] sm:$0xff] %vm758_vm2, %v599_v23  ;;  %763 = vst.msk [vmem:[%s1676_s12 + $0x20] sm:$0xff] %vm758_vm2, %v674_v24 }
 0x240   : > { %v1020_v25 = vpop.f32.mrb[4].mxu1 }
 0x241   : > { %766 = vst.msk [vmem:[%s1676_s12 + $0x38] sm:$0xff] %vm758_vm2, %v1020_v25  ;;  %v749_v26 = vpop.f32.mrb[5].mxu1 }
 0x242   : > { %765 = vst.msk [vmem:[%s1676_s12 + $0x30] sm:$0xff] %vm758_vm2, %v749_v26 }
 0x243 PF: > { %s1865_s26 = sld [smem:[#allocation12_spill]]  ;;  %s975_s13 = sshll.u32 %s1351_s24, 3 }
 0x244   : > { %s784_s30 = sshll.u32 %s1676_s12, 4  ;;  %s1866_s8 = sld [smem:[#allocation20_spill]]  ;;  %s1732_s30 = int_to_ptr.vmem [resolvable:$true] %s784_s30 }
 0x245   : > { %s1741_s10 = scalar_lea.sflag [#allocation4], %s303_s21  ;;  %s1217_s4 = scalar_lea.vmem %s1732_s30, 1024 }
 0x246   : > { %p1218_p13 = scmp.ne.s32.totalorder %s1732_s30, %s1217_s4  ;;  %p1867_p2 = scmp.ne.s32.totalorder %s1856_s6, 0 }
 0x247   : > { %s1373_s24 = smov [#allocation7]  }
 0x248   : > { %p1219_p10 = pnand %p1218_p13, %p1867_p2  ;;  %s1221_s12 = sshll.u32 %s1373_s24, 4  ;;  %s1222_s12 = int_to_ptr.vmem [resolvable:$false] %s1221_s12 }
 0x249   : > { %s1021_s0 = smul.u32 24, %s1865_s26  ;;  %s1223_s7 = scalar_lea.vmem %s1222_s12, 2048 }
 0x24a   : > { %p1220_p1 = pneg %p1219_p10  ;;  %p1224_p3 = scmp.lt.s32.totalorder %s1732_s30, %s1222_s12 }
 0x24b   : > { %s781_s11 = sadd.s32 %s1021_s0, %s975_s13  ;;  %p1225_p5 = scmp.lt.s32.totalorder %s1223_s7, %s1217_s4 }
 0x24c   : > { %s965_s18 = sshll.u32 %s781_s11, 7 }
 0x24d   : > { %s1737_s9 = scalar_lea.hbm %s1866_s8, %s965_s18  ;;  %p1226_p4 = por %p1225_p5, %p1224_p3 }
 0x24f   : > { %p1227_p8 = pnand %p1226_p4, %p1220_p1 }
 0x251   : > { %1230 = shalt.err (!%p1227_p8)
}
 0x252   : > { %s1231_s21 = scalar_lea.hbm %s1737_s9, 1024  ;;  %s1235_s26 = scalar_lea.hbm %s1866_s8, 12288 }
 0x253   : > { %p1232_p6 = scmp.ne.s32.totalorder %s1737_s9, %s1231_s21  ;;  %p1236_p7 = scmp.lt.u32.totalorder %s1737_s9, %s1866_s8 }
 0x254   : > { %p1237_p12 = scmp.lt.u32.totalorder %s1235_s26, %s1231_s21  ;;  %p1239_p13 = scmp.lt.u32.totalorder %s1231_s21, %s1737_s9 }
 0x255   : > { %p1233_p11 = pnand %p1232_p6, %p1867_p2 }
 0x256   : > { %p1238_p9 = por %p1237_p12, %p1236_p7 }
 0x257   : > { %p1234_p0 = pneg %p1233_p11 }
 0x258   : > { %p1240_p10 = por %p1239_p13, %p1238_p9 }
 0x25a   : > { %p1241_p1 = pnand %p1240_p10, %p1234_p0 }
 0x25c   : > { %1244 = shalt.err (!%p1241_p1)
}
 0x25d   : > { %s1374_s11 = smov 128   ;;  %s1375_s18 = smov 8  }
 0x25e   : > { %1026 = dma.vmem_to_hbm [thread:$0]  (%p1867_p2), %s1732_s30, 1024, %s1737_s9, %s1741_s10, %s1374_s11, %s1374_s11, %s1375_s18  }
 0x25f PF: > { %p1040_p3 = scmp.ge.s32.totalorder %s1367_s28, 2  ;;  %s799_s29 = sand.u32 1, %s1315_s15  }
 0x260   : > { %p1868_p5 = scmp.ne.s32.totalorder %s1858_s5, 0  ;;  %s800_s25 = scalar_lea.sflag [#allocation4], %s799_s29 }
 0x262   : > { %p1036_p4 = pnand %p1040_p3, %p1868_p5 }
 0x264   : > { %1310 = dma.done.wait (!%p1036_p4), %s800_s25, 1024  }
 0x265   : > { %1312 = vsyncadd (!%p1036_p4), %s800_s25, 4294966272  ;;  %s23_s28 = sadd.s32 1, %s1367_s28   ;;  %s1870_s6 = sld [smem:[#allocation18_spill]] }
 0x266   : > { %p1770_p8 = scmp.ge.s32.totalorder %s23_s28, 14   ;;  %s1871_s30 = sld [smem:[#allocation17_spill]] }
 0x267   : > { %s1872_s9 = sld [smem:[#allocation11_spill]]  ;;  %s1873_s23 = sld [smem:[#allocation16_spill]] }
 0x268   : > { %s1874_s24 = sld [smem:[#allocation13_spill]]  ;;  %s1875_s26 = sld [smem:[#allocation14_spill]] }
 0x269   : > { %s1876_s5 = sld [smem:[#allocation15_spill]]  ;;  %s1877_s15 = smov %s1319_s16 }
 0x26a   : > { %s1878_s16 = smov %s1323_s17  ;;  %s1880_s18 = smov %s1331_s19 }
 0x26b   : > { %s1879_s17 = smov %s1870_s6  ;;  %s1881_s19 = smov %s1335_s20 }
 0x26c   : > { %s1882_s20 = smov %s1871_s30  ;;  %s1883_s21 = smov %s1343_s22 }
 0x26d   : > { %s1884_s22 = smov %s1872_s9  ;;  %s1885_s25 = smov %s1363_s27 }
 0x26e   :  { %22 = sbr.rel (!%p1770_p8) target bundleno = 15 (0xf), region = 102 }
 0x26f   : > { %s1886_s27 = smov %s1876_s5 }
 0x275   :  { %805 = vsyncpa [#allocation3], 1 }
 0x276   :  { %807 = vsyncpa [#allocation3 + $0x1], 1 }
 0x277   :  { %808 = vsyncpa [#allocation6], 1 }
 0x278   :  { %810 = vsyncpa [#allocation6 + $0x1], 1 }
 0x279   :  { %811 = vsyncpa [#allocation4], 1 }
 0x27a   :  { %813 = vsyncpa [#allocation4 + $0x1], 1 }

</bundles_post_ra>
